<compile_context>
chip_gen: v6e
topology: v6e:2x2x1
jax: 0.10.0
libtpu: 0.0.40
codegen_flags: <defaults>
</compile_context>

<pallas_src>
import functools

import jax
import jax.numpy as jnp
from jax.experimental import pallas as pl
from jax.experimental.pallas import tpu as pltpu


def _residual_conv_kernel(x_ref, w_ref, b_ref, o_ref, xpad_ref, im2col_ref,
                          *, H, W, C, OFF, PADL):
    # x_ref     : (1, C, H*W)  f32   x in NC(HW) layout (conv input + residual)
    # w_ref     : (C, 9*C)     bf16  weights, [co, (dy*3+dx)*C + ci]
    # b_ref     : (C, 1)       f32   conv bias
    # o_ref     : (1, C, H*W)  f32   output, lane-dense NC(HW) layout
    # xpad_ref  : (C, PADL)    bf16  H-padded, lane-offset flattened conv input
    # im2col_ref: (9*C, H*W)   bf16  transposed im2col scratch
    HW = H * W

    # Build the H-padded flattened conv input.  Cast f32->bf16 once; the
    # interior store at lane offset OFF=128 and the halo zero stores are all
    # 128-lane aligned, unmasked.  (Halo re-zeroed every step so the kernel
    # stays correct when the parallel grid is split across TensorCores.)
    xpad_ref[:, :OFF] = jnp.zeros((C, OFF), jnp.bfloat16)
    xpad_ref[:, OFF + HW:] = jnp.zeros((C, PADL - OFF - HW), jnp.bfloat16)
    xpad_ref[:, OFF:OFF + HW] = x_ref[0].astype(jnp.bfloat16)

    # 0/1 masks for the left/right output column of the 6 taps with dx != 1
    # (the H boundary is handled by the zero halo above).  Built once.
    lane = jax.lax.broadcasted_iota(jnp.int32, (C, HW), 1)
    w_idx = lane % W
    mask_l = (w_idx >= 1).astype(jnp.bfloat16)       # drop w == 0     (dx == 0)
    mask_r = (w_idx <= W - 2).astype(jnp.bfloat16)   # drop w == W - 1 (dx == 2)

    # Transposed im2col: row block tap*C + ci, column h*W + w holds
    # x_pad[ci, h + dy - 1, w + dx - 1].  Each tap is one contiguous static
    # lane-slice of xpad; stores to im2col are full-width and tile-aligned.
    for dy in range(3):
        for dx in range(3):
            tap = dy * 3 + dx
            start = OFF + (dy - 1) * W + (dx - 1)
            patch = xpad_ref[:, start:start + HW]            # (C, HW) bf16
            if dx == 0:
                patch = patch * mask_l
            elif dx == 2:
                patch = patch * mask_r
            im2col_ref[tap * C:(tap + 1) * C, :] = patch

    # Single fat-K MXU matmul: (C, 9C) x (9C, HW), bf16 operands, f32 acc.
    acc = jnp.dot(w_ref[...], im2col_ref[...],
                  preferred_element_type=jnp.float32)        # (C, HW) f32

    # Conv bias + ReLU (`blocks` path), then residual add (res_func = add,
    # shortcut = Identity), all in f32 on dense 256-lane rows.
    y = jnp.maximum(acc + b_ref[...], 0.0) + x_ref[0]
    o_ref[0] = y.astype(o_ref.dtype)


def residual_block(x_nchw, w_hwio, b):
    """out = ReLU(Conv3x3(x, padding=1) + b) + x ;  NCHW in / NCHW out."""
    N, C, H, W = x_nchw.shape
    HW = H * W
    # Alignment assumptions of this kernel (pad inputs before calling if not):
    assert C % 8 == 0 and HW % 128 == 0, "need C % 8 == 0 and H*W % 128 == 0"
    assert w_hwio.shape == (3, 3, C, C) and b.shape == (C,)

    OFF = 128                      # lane offset of the interior (aligned stores)
    PADL = OFF + HW + 128          # >= OFF + HW + W + 1, rounded to lane tiles

    # x in (N, C, H*W): a free (contiguous) reshape of NCHW, used for BOTH the
    # conv input (halo built in-kernel) and the residual -> x is read once.
    x_flat = x_nchw.reshape(N, C, HW)

    # Weights: HWIO -> (C_out, 9*C_in) bf16, column order (dy, dx, ci)
    # matching the im2col row order.  Bias as (C, 1) f32 for lane broadcast.
    w_t = jnp.transpose(w_hwio.reshape(9 * C, C)).astype(jnp.bfloat16)
    b2 = b.astype(jnp.float32).reshape(C, 1)

    kernel = functools.partial(_residual_conv_kernel, H=H, W=W, C=C,
                               OFF=OFF, PADL=PADL)

    out = pl.pallas_call(
        kernel,
        out_shape=jax.ShapeDtypeStruct((N, C, HW), x_nchw.dtype),
        grid_spec=pltpu.PrefetchScalarGridSpec(
            num_scalar_prefetch=0,
            # One step per batch element; the parallel extent (N=2) balances
            # v7x's two TensorCores.  For large H*W*C, add an H-tile grid
            # axis with a 2-row halo so the pipeline has >=4-8 steps.
            grid=(N,),
            in_specs=[
                pl.BlockSpec((1, C, HW), lambda n: (n, 0, 0)),
                pl.BlockSpec((C, 9 * C), lambda n: (0, 0)),
                pl.BlockSpec((C, 1), lambda n: (0, 0)),
            ],
            out_specs=pl.BlockSpec((1, C, HW), lambda n: (n, 0, 0)),
            scratch_shapes=[
                pltpu.VMEM((C, PADL), jnp.bfloat16),      # H-padded conv input
                pltpu.VMEM((9 * C, HW), jnp.bfloat16),    # transposed im2col
            ],
        ),
        compiler_params=pltpu.CompilerParams(
            dimension_semantics=("parallel",),
            # ~0.3 MiB actually used per step; cap leaves headroom under
            # v7x's 64 MiB physical VMEM (re-derive when H-tiling is added).
            vmem_limit_bytes=48 * 1024 * 1024),
    )(x_flat, w_t, b2)

    return out.reshape(N, C, H, W)


if __name__ == "__main__":
    key = jax.random.PRNGKey(0)
    kx, kw, kb = jax.random.split(key, 3)

    N, C, H, W = 2, 32, 16, 16
    x = jax.random.normal(kx, (N, C, H, W), dtype=jnp.float32)

    # Deterministic synthetic conv parameters (Conv2d(C, C, 3, padding=1)).
    fan_in = C * 3 * 3
    w_hwio = jax.random.normal(kw, (3, 3, C, C), dtype=jnp.float32) / jnp.sqrt(fan_in)
    b = jax.random.normal(kb, (C,), dtype=jnp.float32) * 0.01

    out = residual_block(x, w_hwio, b)
    jax.block_until_ready(out)
    assert out.shape == (N, C, H, W)

    # Tight check: reference using the same bf16 rounding of x and w that the
    # kernel's MXU matmul sees (f32 math / accumulation on both sides).
    xr = x.astype(jnp.bfloat16).astype(jnp.float32)
    wr = w_hwio.astype(jnp.bfloat16).astype(jnp.float32)
    conv_r = jax.lax.conv_general_dilated(
        xr, jnp.transpose(wr, (3, 2, 0, 1)),            # HWIO -> OIHW
        window_strides=(1, 1), padding="SAME",
        dimension_numbers=("NCHW", "OIHW", "NCHW"),
        precision=jax.lax.Precision.HIGHEST,
    ) + b[None, :, None, None]
    ref_r = jnp.maximum(conv_r, 0.0) + x
    assert jnp.allclose(out, ref_r, atol=1e-3, rtol=1e-3), (
        float(jnp.max(jnp.abs(out - ref_r))))

    # Loose sanity check against the full-f32 forward (bf16 rounding error
    # of the conv only).
    conv_f = jax.lax.conv_general_dilated(
        x, jnp.transpose(w_hwio, (3, 2, 0, 1)),
        window_strides=(1, 1), padding="SAME",
        dimension_numbers=("NCHW", "OIHW", "NCHW"),
        precision=jax.lax.Precision.HIGHEST,
    ) + b[None, :, None, None]
    ref_f = jnp.maximum(conv_f, 0.0) + x
    assert jnp.allclose(out, ref_f, atol=5e-2, rtol=5e-2)

    print("KERNEL_OK")
</pallas_src>

<mosaic_0001>
module attributes {stable_mosaic.version = 11 : i64} {
  func.func @_residual_conv_kernel(%arg0: i32, %arg1: memref<1x32x256xf32, #tpu.memory_space<vmem>>, %arg2: memref<32x288xbf16, #tpu.memory_space<vmem>>, %arg3: memref<32x1xf32, #tpu.memory_space<vmem>>, %arg4: memref<1x32x256xf32, #tpu.memory_space<vmem>>, %arg5: memref<32x512xbf16, #tpu.memory_space<vmem>>, %arg6: memref<288x256xbf16, #tpu.memory_space<vmem>>) attributes {dimension_semantics = [#tpu.dimension_semantics<parallel>], iteration_bounds = array<i64: 2>, scalar_prefetch = 0 : i64, scratch_operands = 2 : i64, tpu.core_type = #tpu.core_type<tc>, window_params = [{transform_indices = @transform_0, window_bounds = array<i64: 1, 32, 256>}, {pipeline_mode = #tpu.pipeline_mode<synchronous>, transform_indices = @transform_1, window_bounds = array<i64: 32, 288>}, {pipeline_mode = #tpu.pipeline_mode<synchronous>, transform_indices = @transform_2, window_bounds = array<i64: 32, 1>}, {transform_indices = @transform_3, window_bounds = array<i64: 1, 32, 256>}]} {
    %cst = arith.constant 0.000000e+00 : bf16
    %0 = vector.broadcast %cst : bf16 to vector<32x128xbf16>
    %c0 = arith.constant 0 : index
    %c0_0 = arith.constant 0 : index
    %1 = vector.load %arg5[%c0, %c0_0] : memref<32x512xbf16, #tpu.memory_space<vmem>>, vector<32x128xbf16>
    tpu.vector_store %arg5[%c0, %c0_0], %0 {strides = array<i32>} : memref<32x512xbf16, #tpu.memory_space<vmem>>, vector<32x128xbf16>,
    %cst_1 = arith.constant 0.000000e+00 : bf16
    %2 = vector.broadcast %cst_1 : bf16 to vector<32x128xbf16>
    %c0_2 = arith.constant 0 : index
    %c384 = arith.constant 384 : index
    %3 = vector.load %arg5[%c0_2, %c384] : memref<32x512xbf16, #tpu.memory_space<vmem>>, vector<32x128xbf16>
    tpu.vector_store %arg5[%c0_2, %c384], %2 {strides = array<i32>} : memref<32x512xbf16, #tpu.memory_space<vmem>>, vector<32x128xbf16>,
    %c0_3 = arith.constant 0 : index
    %c0_4 = arith.constant 0 : index
    %c0_5 = arith.constant 0 : index
    %4 = vector.load %arg1[%c0_3, %c0_4, %c0_5] : memref<1x32x256xf32, #tpu.memory_space<vmem>>, vector<1x32x256xf32>
    %5 = vector.shape_cast %4 : vector<1x32x256xf32> to vector<32x256xf32>
    %6 = arith.truncf %5 : vector<32x256xf32> to vector<32x256xbf16>
    %c0_6 = arith.constant 0 : index
    %c128 = arith.constant 128 : index
    %7 = vector.load %arg5[%c0_6, %c128] : memref<32x512xbf16, #tpu.memory_space<vmem>>, vector<32x256xbf16>
    tpu.vector_store %arg5[%c0_6, %c128], %6 {strides = array<i32>} : memref<32x512xbf16, #tpu.memory_space<vmem>>, vector<32x256xbf16>,
    %8 = tpu.iota {dimensions = array<i32: 1>} : vector<32x256xi32>
    %c16_i32 = arith.constant 16 : i32
    %c0_i32 = arith.constant 0 : i32
    %9 = arith.cmpi eq, %c16_i32, %c0_i32 : i32
    %c1_i32 = arith.constant 1 : i32
    %10 = arith.select %9, %c1_i32, %c16_i32 : i32
    %11 = vector.broadcast %10 : i32 to vector<32x256xi32>
    %12 = arith.remsi %8, %11 : vector<32x256xi32>
    %c0_i32_7 = arith.constant 0 : i32
    %13 = vector.broadcast %c0_i32_7 : i32 to vector<32x256xi32>
    %14 = arith.cmpi ne, %12, %13 : vector<32x256xi32>
    %c0_i32_8 = arith.constant 0 : i32
    %15 = vector.broadcast %c0_i32_8 : i32 to vector<32x256xi32>
    %16 = arith.cmpi slt, %12, %15 : vector<32x256xi32>
    %c0_i32_9 = arith.constant 0 : i32
    %17 = arith.cmpi slt, %10, %c0_i32_9 : i32
    %18 = vector.broadcast %17 : i1 to vector<32x256xi1>
    %19 = vector.broadcast %18 : vector<32x256xi1> to vector<32x256xi1>
    %20 = arith.xori %16, %19 : vector<32x256xi1>
    %21 = arith.andi %20, %14 : vector<32x256xi1>
    %22 = vector.broadcast %10 : i32 to vector<32x256xi32>
    %23 = arith.addi %12, %22 : vector<32x256xi32>
    %24 = arith.select %21, %23, %12 : vector<32x256xi1>, vector<32x256xi32>
    %c1_i32_10 = arith.constant 1 : i32
    %25 = vector.broadcast %c1_i32_10 : i32 to vector<32x256xi32>
    %26 = arith.cmpi sge, %24, %25 : vector<32x256xi32>
    %27 = arith.extui %26 : vector<32x256xi1> to vector<32x256xi32>
    %28 = arith.sitofp %27 : vector<32x256xi32> to vector<32x256xf32>
    %29 = arith.truncf %28 : vector<32x256xf32> to vector<32x256xbf16>
    %c14_i32 = arith.constant 14 : i32
    %30 = vector.broadcast %c14_i32 : i32 to vector<32x256xi32>
    %31 = arith.cmpi sle, %24, %30 : vector<32x256xi32>
    %32 = arith.extui %31 : vector<32x256xi1> to vector<32x256xi32>
    %33 = arith.sitofp %32 : vector<32x256xi32> to vector<32x256xf32>
    %34 = arith.truncf %33 : vector<32x256xf32> to vector<32x256xbf16>
    %c0_11 = arith.constant 0 : index
    %c111 = arith.constant 111 : index
    %35 = vector.load %arg5[%c0_11, %c111] : memref<32x512xbf16, #tpu.memory_space<vmem>>, vector<32x256xbf16>
    %36 = arith.mulf %35, %29 : vector<32x256xbf16>
    %c0_12 = arith.constant 0 : index
    %c0_13 = arith.constant 0 : index
    %37 = vector.load %arg6[%c0_12, %c0_13] : memref<288x256xbf16, #tpu.memory_space<vmem>>, vector<32x256xbf16>
    tpu.vector_store %arg6[%c0_12, %c0_13], %36 {strides = array<i32>} : memref<288x256xbf16, #tpu.memory_space<vmem>>, vector<32x256xbf16>,
    %c0_14 = arith.constant 0 : index
    %c112 = arith.constant 112 : index
    %38 = vector.load %arg5[%c0_14, %c112] : memref<32x512xbf16, #tpu.memory_space<vmem>>, vector<32x256xbf16>
    %c32 = arith.constant 32 : index
    %c0_15 = arith.constant 0 : index
    %39 = vector.load %arg6[%c32, %c0_15] : memref<288x256xbf16, #tpu.memory_space<vmem>>, vector<32x256xbf16>
    tpu.vector_store %arg6[%c32, %c0_15], %38 {strides = array<i32>} : memref<288x256xbf16, #tpu.memory_space<vmem>>, vector<32x256xbf16>,
    %c0_16 = arith.constant 0 : index
    %c113 = arith.constant 113 : index
    %40 = vector.load %arg5[%c0_16, %c113] : memref<32x512xbf16, #tpu.memory_space<vmem>>, vector<32x256xbf16>
    %41 = arith.mulf %40, %34 : vector<32x256xbf16>
    %c64 = arith.constant 64 : index
    %c0_17 = arith.constant 0 : index
    %42 = vector.load %arg6[%c64, %c0_17] : memref<288x256xbf16, #tpu.memory_space<vmem>>, vector<32x256xbf16>
    tpu.vector_store %arg6[%c64, %c0_17], %41 {strides = array<i32>} : memref<288x256xbf16, #tpu.memory_space<vmem>>, vector<32x256xbf16>,
    %c0_18 = arith.constant 0 : index
    %c127 = arith.constant 127 : index
    %43 = vector.load %arg5[%c0_18, %c127] : memref<32x512xbf16, #tpu.memory_space<vmem>>, vector<32x256xbf16>
    %44 = arith.mulf %43, %29 : vector<32x256xbf16>
    %c96 = arith.constant 96 : index
    %c0_19 = arith.constant 0 : index
    %45 = vector.load %arg6[%c96, %c0_19] : memref<288x256xbf16, #tpu.memory_space<vmem>>, vector<32x256xbf16>
    tpu.vector_store %arg6[%c96, %c0_19], %44 {strides = array<i32>} : memref<288x256xbf16, #tpu.memory_space<vmem>>, vector<32x256xbf16>,
    %c0_20 = arith.constant 0 : index
    %c128_21 = arith.constant 128 : index
    %46 = vector.load %arg5[%c0_20, %c128_21] : memref<32x512xbf16, #tpu.memory_space<vmem>>, vector<32x256xbf16>
    %c128_22 = arith.constant 128 : index
    %c0_23 = arith.constant 0 : index
    %47 = vector.load %arg6[%c128_22, %c0_23] : memref<288x256xbf16, #tpu.memory_space<vmem>>, vector<32x256xbf16>
    tpu.vector_store %arg6[%c128_22, %c0_23], %46 {strides = array<i32>} : memref<288x256xbf16, #tpu.memory_space<vmem>>, vector<32x256xbf16>,
    %c0_24 = arith.constant 0 : index
    %c129 = arith.constant 129 : index
    %48 = vector.load %arg5[%c0_24, %c129] : memref<32x512xbf16, #tpu.memory_space<vmem>>, vector<32x256xbf16>
    %49 = arith.mulf %48, %34 : vector<32x256xbf16>
    %c160 = arith.constant 160 : index
    %c0_25 = arith.constant 0 : index
    %50 = vector.load %arg6[%c160, %c0_25] : memref<288x256xbf16, #tpu.memory_space<vmem>>, vector<32x256xbf16>
    tpu.vector_store %arg6[%c160, %c0_25], %49 {strides = array<i32>} : memref<288x256xbf16, #tpu.memory_space<vmem>>, vector<32x256xbf16>,
    %c0_26 = arith.constant 0 : index
    %c143 = arith.constant 143 : index
    %51 = vector.load %arg5[%c0_26, %c143] : memref<32x512xbf16, #tpu.memory_space<vmem>>, vector<32x256xbf16>
    %52 = arith.mulf %51, %29 : vector<32x256xbf16>
    %c192 = arith.constant 192 : index
    %c0_27 = arith.constant 0 : index
    %53 = vector.load %arg6[%c192, %c0_27] : memref<288x256xbf16, #tpu.memory_space<vmem>>, vector<32x256xbf16>
    tpu.vector_store %arg6[%c192, %c0_27], %52 {strides = array<i32>} : memref<288x256xbf16, #tpu.memory_space<vmem>>, vector<32x256xbf16>,
    %c0_28 = arith.constant 0 : index
    %c144 = arith.constant 144 : index
    %54 = vector.load %arg5[%c0_28, %c144] : memref<32x512xbf16, #tpu.memory_space<vmem>>, vector<32x256xbf16>
    %c224 = arith.constant 224 : index
    %c0_29 = arith.constant 0 : index
    %55 = vector.load %arg6[%c224, %c0_29] : memref<288x256xbf16, #tpu.memory_space<vmem>>, vector<32x256xbf16>
    tpu.vector_store %arg6[%c224, %c0_29], %54 {strides = array<i32>} : memref<288x256xbf16, #tpu.memory_space<vmem>>, vector<32x256xbf16>,
    %c0_30 = arith.constant 0 : index
    %c145 = arith.constant 145 : index
    %56 = vector.load %arg5[%c0_30, %c145] : memref<32x512xbf16, #tpu.memory_space<vmem>>, vector<32x256xbf16>
    %57 = arith.mulf %56, %34 : vector<32x256xbf16>
    %c256 = arith.constant 256 : index
    %c0_31 = arith.constant 0 : index
    %58 = vector.load %arg6[%c256, %c0_31] : memref<288x256xbf16, #tpu.memory_space<vmem>>, vector<32x256xbf16>
    tpu.vector_store %arg6[%c256, %c0_31], %57 {strides = array<i32>} : memref<288x256xbf16, #tpu.memory_space<vmem>>, vector<32x256xbf16>,
    %c0_32 = arith.constant 0 : index
    %c0_33 = arith.constant 0 : index
    %59 = vector.load %arg2[%c0_32, %c0_33] : memref<32x288xbf16, #tpu.memory_space<vmem>>, vector<32x288xbf16>
    %c0_34 = arith.constant 0 : index
    %c0_35 = arith.constant 0 : index
    %60 = vector.load %arg6[%c0_34, %c0_35] : memref<288x256xbf16, #tpu.memory_space<vmem>>, vector<288x256xbf16>
    %cst_36 = arith.constant dense<0.000000e+00> : vector<32x256xf32>
    %61 = tpu.matmul %59, %60, %cst_36 {dimension_numbers = #tpu.dot_dimension_numbers<[1], [0], [0], [1], [0, 0, 1, 1], [], []>} : vector<32x288xbf16>, vector<288x256xbf16>, vector<32x256xf32> -> vector<32x256xf32>
    %c0_37 = arith.constant 0 : index
    %c0_38 = arith.constant 0 : index
    %62 = vector.load %arg3[%c0_37, %c0_38] : memref<32x1xf32, #tpu.memory_space<vmem>>, vector<32x1xf32>
    %63 = vector.broadcast %62 : vector<32x1xf32> to vector<32x256xf32>
    %64 = arith.addf %61, %63 : vector<32x256xf32>
    %cst_39 = arith.constant 0.000000e+00 : f32
    %65 = vector.broadcast %cst_39 : f32 to vector<32x256xf32>
    %66 = arith.maximumf %64, %65 : vector<32x256xf32>
    %c0_40 = arith.constant 0 : index
    %c0_41 = arith.constant 0 : index
    %c0_42 = arith.constant 0 : index
    %67 = vector.load %arg1[%c0_40, %c0_41, %c0_42] : memref<1x32x256xf32, #tpu.memory_space<vmem>>, vector<1x32x256xf32>
    %68 = vector.shape_cast %67 : vector<1x32x256xf32> to vector<32x256xf32>
    %69 = arith.addf %66, %68 : vector<32x256xf32>
    %c0_43 = arith.constant 0 : index
    %c0_44 = arith.constant 0 : index
    %c0_45 = arith.constant 0 : index
    %70 = vector.load %arg4[%c0_43, %c0_44, %c0_45] : memref<1x32x256xf32, #tpu.memory_space<vmem>>, vector<1x32x256xf32>
    %71 = vector.shape_cast %70 : vector<1x32x256xf32> to vector<32x256xf32>
    %72 = vector.shape_cast %69 : vector<32x256xf32> to vector<1x32x256xf32>
    tpu.vector_store %arg4[%c0_43, %c0_44, %c0_45], %72 {strides = array<i32>} : memref<1x32x256xf32, #tpu.memory_space<vmem>>, vector<1x32x256xf32>,
    return
  }
  func.func @transform_0(%arg0: i32) -> (i32, i32, i32) {
    %c0_i32 = arith.constant 0 : i32
    %c0_i32_0 = arith.constant 0 : i32
    %c0_i32_1 = arith.constant 0 : i32
    return %arg0, %c0_i32, %c0_i32_0 : i32, i32, i32
  }
  func.func @transform_1(%arg0: i32) -> (i32, i32) {
    %c0_i32 = arith.constant 0 : i32
    %c0_i32_0 = arith.constant 0 : i32
    %c0_i32_1 = arith.constant 0 : i32
    return %c0_i32, %c0_i32_0 : i32, i32
  }
  func.func @transform_2(%arg0: i32) -> (i32, i32) {
    %c0_i32 = arith.constant 0 : i32
    %c0_i32_0 = arith.constant 0 : i32
    %c0_i32_1 = arith.constant 0 : i32
    return %c0_i32, %c0_i32_0 : i32, i32
  }
  func.func @transform_3(%arg0: i32) -> (i32, i32, i32) {
    %c0_i32 = arith.constant 0 : i32
    %c0_i32_0 = arith.constant 0 : i32
    %c0_i32_1 = arith.constant 0 : i32
    return %arg0, %c0_i32, %c0_i32_0 : i32, i32, i32
  }
}

</mosaic_0001>

<bundles_post_ra>
// kernel: tpu_custom_call.1
= control target key start
LH: loop header
LB: loop body
LE: loop exit
PB: predicated region body
PF: predicated region fallthrough
CT: control target
= control target key end

     0   :  { %8 = vsyncpa [#allocation5], 0  ;;  %s2204_s0 = inlined_call_operand.hbm [shape: f32[2,32,256], index: 0, kind: input, shape index: {}]   ;;  %s2205_s1 = inlined_call_operand.hbm [shape: bf16[32,288], index: 1, kind: input, shape index: {}]   ;;  %s2206_s2 = inlined_call_operand.vmem [shape: f32[32,1], index: 2, kind: input, shape index: {}]   ;;  %s2207_s3 = inlined_call_operand.hbm [shape: f32[2,32,256], index: 3, kind: output, shape index: {}]  }
   0x1   :  { %10 = vsyncpa [#allocation5 + $0x1], 0 }
   0x2   :  { %11 = vsyncpa [#allocation8], 0 }
   0x3   :  { %12 = vsyncpa [#allocation6], 0 }
   0x4   :  { %14 = vsyncpa [#allocation6 + $0x1], 0  ;;  %s1697_s12 = smov 0   ;;  %s1699_s13 = smov 0  }
   0x5   :  { %s1701_s14 = smov 0   ;;  %s1703_s15 = smov 0  }
   0x6 LB: > { %s1718_s16 = sadd.s32 4294967295, %s1657_s15   ;;  %s1371_s17 = sadd.s32 4294967294, %s1657_s15   ;;  %s1657_s15 = sphi %s1703_s15, %s2229_s15   ;;  %s1653_s14 = sphi %s1701_s14, %s2228_s14   ;;  %s1649_s13 = sphi %s1699_s13, %s2227_s13   ;;  %s1645_s12 = sphi %s1697_s12, %s2226_s12  }
   0x7   : > { %p40_p0 = scmp.ne.s32.totalorder %s1649_s13, %s1645_s12  ;;  %p2208_p1 = scmp.eq.s32.totalorder %s1718_s16, 0 }
   0x8   : > { %p112_p3 = scmp.eq.s32.totalorder %s1371_s17, 1  ;;  %p1372_p5 = scmp.ge.s32.totalorder %s1657_s15, 1 }
   0x9   : > { %p1727_p4 = por %p2208_p1, %p40_p0  ;;  %p119_p7 = scmp.lt.s32.totalorder %s1657_s15, 3 }
   0xa   : > { %p1732_p6 = por %p112_p3, %p40_p0  ;;  %s1659_s21 = smov [#allocation7]  }
   0xb   : > { %s2212_s18 = scalar_select %p1727_p4, 1, 0 }
   0xc   : > { %s2213_s19 = scalar_select %p1732_p6, 1, 0 }
   0xd   : > { %p1737_p8 = pnand %p1372_p5, %p119_p7  ;;  %s131_s22 = sshll.u32 %s1659_s21, 4  ;;  %s132_s22 = int_to_ptr.vmem [resolvable:$true] %s131_s22 }
   0xe   : > { %s1751_s24 = sadd.s32 1, %s1657_s15   ;;  %s27_s25 = sadd.s32 1, %s1653_s14 }
   0xf   : > { %s2214_s20 = scalar_select %p1737_p8, 1, 0 }
  0x10   : > { %p1457_p9 = pneg %p1737_p8  ;;  %s24_s26 = ssub.s32 %s1657_s15, %s1751_s24 }
  0x11   : > { %s1546_s27 = scalar_lea.vmem %s132_s22, 768  ;;  %p1554_p5 = scmp.lt.s32.totalorder %s132_s22, %s132_s22 }
  0x12   : > { %p1746_p11 = pnand %p1457_p9, %p2208_p1  ;;  %p1547_p13 = scmp.ne.s32.totalorder %s132_s22, %s1546_s27 }
  0x13   : > { %p1555_p7 = scmp.lt.s32.totalorder %s1546_s27, %s1546_s27 }
  0x14   : > { %p1537_p12 = pneg %p1746_p11 }
  0x15   : > { %p1556_p10 = por %p1555_p7, %p1554_p5 }
  0x16   : > { %p1549_p0 = pnand %p1547_p13, %p1537_p12 }
  0x18   : > { %p1550_p3 = pneg %p1549_p0 }
  0x1a   : > { %p1557_p2 = pnand %p1556_p10, %p1550_p3 }
  0x1c   : > { %1560 = shalt.err (!%p1557_p2)
}
  0x1d   : > { %s1660_s28 = smov 192   ;;  %s1661_s29 = smov 12  }
  0x1e   : > { %1460 = dma.hbm_to_vmem [thread:$0]  (!%p1746_p11), %s2205_s1, 768, %s132_s22, [#allocation8], %s1660_s28, %s1660_s28, %s1661_s29  }
  0x1f   : > { %p25_p9 = scmp.eq.s32.totalorder %s24_s26, 0  ;;  %p34_p12 = scmp.ne.s32.totalorder %s1653_s14, %s1649_s13 }
  0x20   : > { %p35_p10 = scmp.eq.s32.totalorder %s1657_s15, 0  ;;  %p1470_p2 = scmp.lt.s32.totalorder %s1657_s15, 2 }
  0x21   : > { %s1768_s5 = scalar_select %p25_p9, %s1653_s14, %s27_s25  }
  0x22   : > { %p36_p13 = por %p35_p10, %p34_p12  ;;  %p2216_p0 = scmp.eq.s32.totalorder %s1718_s16, 1 }
  0x23   : > { %s148_s7 = sand.u32 1, %s1653_s14   ;;  %s1441_s8 = sshll.u32 %s1657_s15, 10 }
  0x24   : > { %p1772_p3 = por %p2216_p0, %p34_p12  ;;  %s1375_s9 = sshll.u32 %s148_s7, 6 }
  0x25   : > { %s1781_s17 = scalar_lea.hbm %s2204_s0, %s1441_s8  ;;  %s152_s21 = scalar_lea.vmem [#allocation4], %s1375_s9 }
  0x26   : > { %s2217_s6 = scalar_select %p1772_p3, 1, 0 }
  0x27   : > { %s159_s22 = sshll.u32 %s152_s21, 4  ;;  %p1783_p11 = pnand %p1470_p2, %p36_p13  ;;  %s1787_s22 = int_to_ptr.vmem [resolvable:$true] %s159_s22 }
  0x28   : > { %s1789_s25 = scalar_lea.sflag [#allocation5], %s148_s7  ;;  %s1561_s26 = scalar_lea.hbm %s1781_s17, 1024 }
  0x29   : > { %p1562_p5 = scmp.ne.s32.totalorder %s1781_s17, %s1561_s26  ;;  %p1563_p7 = pneg %p1783_p11 }
  0x2a   : > { %s1566_s29 = scalar_lea.hbm %s2204_s0, 2048  ;;  %p1567_p10 = scmp.lt.s32.totalorder %s1781_s17, %s2204_s0 }
  0x2b   : > { %p1564_p9 = pnand %p1563_p7, %p1562_p5  ;;  %p1568_p2 = scmp.lt.s32.totalorder %s1566_s29, %s1561_s26 }
  0x2d   : > { %p1565_p12 = pneg %p1564_p9  ;;  %p1569_p13 = por %p1568_p2, %p1567_p10 }
  0x2f   : > { %p1570_p0 = pnand %p1569_p13, %p1565_p12 }
  0x31   : > { %1573 = shalt.err (!%p1570_p0)
}
  0x32   : > { %s1574_s7 = scalar_lea.vmem %s1787_s22, 1024  ;;  %s1662_s8 = smov [#allocation4]  }
  0x33   : > { %p1575_p1 = scmp.ne.s32.totalorder %s1787_s22, %s1574_s7  ;;  %s1579_s9 = sshll.u32 %s1662_s8, 4  ;;  %s1580_s9 = int_to_ptr.vmem [resolvable:$false] %s1579_s9 }
  0x34   : > { %s1581_s10 = scalar_lea.vmem %s1580_s9, 2048  ;;  %p1582_p9 = scmp.lt.s32.totalorder %s1787_s22, %s1580_s9 }
  0x35   : > { %p1577_p6 = pnand %p1575_p1, %p1563_p7  ;;  %p1583_p3 = scmp.lt.s32.totalorder %s1581_s10, %s1574_s7 }
  0x37   : > { %p1578_p5 = pneg %p1577_p6  ;;  %p1584_p4 = por %p1583_p3, %p1582_p9 }
  0x39   : > { %p1585_p8 = pnand %p1584_p4, %p1578_p5 }
  0x3b   : > { %1588 = shalt.err (!%p1585_p8)
}
  0x3c   : > { %s1663_s11 = smov 256   ;;  %s1664_s21 = smov 16  }
  0x3d   : > { %1464 = dma.hbm_to_vmem [thread:$0]  (!%p1783_p11), %s1781_s17, 1024, %s1787_s22, %s1789_s25, %s1663_s11, %s1663_s11, %s1664_s21  }
  0x3e   : > { %p2219_p1 = scmp.ne.s32.totalorder %s2214_s20, 0 }
  0x3f   : > { %s1813_s26 = sand.u32 (!%p2219_p1), 1, %s1649_s13   ;;  %p2220_p4 = scmp.ne.s32.totalorder (!%p2219_p1), %s2212_s18, 0 }
  0x40   : > { %171 = sbr.rel (%p2219_p1) target bundleno = 647 (0x287), region = 32  ;;  %s1379_s27 = sshll.u32 (!%p2219_p1), %s1813_s26, 6 }
  0x41   : > { %s174_s28 = scalar_lea.sflag (!%p2219_p1), [#allocation5], %s1813_s26  ;;  %s1819_s29 = scalar_lea.vmem (!%p2219_p1), [#allocation4], %s1379_s27 }
  0x45   : > { %1632 = dma.done.wait (%p2220_p4), %s174_s28, 1024  }
  0x46   : > { %1634 = vsyncadd (%p2220_p4), %s174_s28, 4294966272  ;;  %v249_v0 = vlaneseq  ;;  %p2221_p6 = scmp.eq.s32.totalorder %s1718_s16, 0 }
  0x48   : > { %1636 = dma.done.wait (%p2221_p6), [#allocation8], 768   ;;  %p2222_p8 = pmov %p2221_p6 }
  0x49   : > { %v1665_v1 = vmov 0   ;;  %v250_v2 = vand.u32 127, %v249_v0  ;;  %v1666_v6 = vmov 0.0   ;;  %v1841_v8 = vld [vmem:[%s1819_s29 + $0x20] sm:$0xff]  ;;  %v1844_v9 = vld [vmem:[%s1819_s29 + $0x28] sm:$0xff]  ;;  %v1847_v10 = vld [vmem:[%s1819_s29 + $0x30] sm:$0xff] }
  0x4a   : > { %1638 = vsyncadd (%p2222_p8), [#allocation8], 4294966528  ;;  %207 = vst [vmem:[#allocation2 + $0x20] sm:$0xf] %v1665_v1  ;;  %1221 = vmatprep.mubr.bf16.mxu1 %v1665_v1  ;;  %1522 = vset.pattern.permute.xlu1 %v1665_v1  ;;  %v1851_v12 = vpack.c.bf16 %v1844_v9, %v1841_v8  ;;  %v1854_v13 = vld [vmem:[%s1819_s29 + $0x38] sm:$0xff]  ;;  %v1857_v14 = vld [vmem:[%s1819_s29] sm:$0xff] }
  0x4b   : > { %205 = vst [vmem:[#allocation2] sm:$0xf] %v1665_v1  ;;  %206 = vst [vmem:[#allocation2 + $0x10] sm:$0xf] %v1665_v1  ;;  %1521 = vset.pattern.permute.xlu0 %v1665_v1  ;;  %v251_v3 = vadd.s32 128, %v250_v2  ;;  %v256_v4 = vand.u32 15, %v250_v2  ;;  %v1864_v18 = vpack.c.bf16 %v1854_v13, %v1847_v10 }
  0x4c   : > { %208 = vst [vmem:[#allocation2 + $0x30] sm:$0xf] %v1665_v1  ;;  %209 = vst [vmem:[#allocation2 + $0xc] sm:$0xf] %v1665_v1  ;;  %v1860_v15 = vld [vmem:[%s1819_s29 + $0x8] sm:$0xff]  ;;  %v1871_v20 = vld [vmem:[%s1819_s29 + $0x10] sm:$0xff] }
  0x4d   : > { %210 = vst [vmem:[#allocation2 + $0x1c] sm:$0xf] %v1665_v1  ;;  %211 = vst [vmem:[#allocation2 + $0x2c] sm:$0xf] %v1665_v1  ;;  %v263_v5 = vand.u32 15, %v251_v3  ;;  %vm276_vm0 = vcmp.ge.s32.totalorder %v256_v4, 1  ;;  %v1868_v19 = vpack.c.bf16 %v1860_v15, %v1857_v14 }
  0x4e   : > { %212 = vst [vmem:[#allocation2 + $0x3c] sm:$0xf] %v1665_v1  ;;  %vm284_vm1 = vcmp.le.s32.totalorder %v256_v4, 14  ;;  %v1386_v7 = vsel %vm276_vm0, 1.0, %v1666_v6  ;;  %v1874_v21 = vld [vmem:[%s1819_s29 + $0x18] sm:$0xff]  ;;  %247 = vst [vmem:[#allocation2 + $0x24] sm:$0xff] %v1851_v12 }
  0x4f   : > { %vm277_vm2 = vcmp.ge.s32.totalorder %v263_v5, 1  ;;  %vm285_vm3 = vcmp.le.s32.totalorder %v263_v5, 14  ;;  %v1388_v11 = vsel %vm284_vm1, 1.0, %v1666_v6  ;;  %v1879_v23 = vpack.c.bf16 %v1874_v21, %v1871_v20  ;;  %248 = vst [vmem:[#allocation2 + $0x34] sm:$0xff] %v1864_v18  ;;  %245 = vst [vmem:[#allocation2 + $0x4] sm:$0xff] %v1868_v19  ;;  %s1667_s18 = smov 127  }
  0x50   : > { %v1387_v16 = vsel %vm277_vm2, 1.0, %v1666_v6  ;;  %v1389_v17 = vsel %vm285_vm3, 1.0, %v1666_v6  ;;  %s1668_s20 = smov 111   ;;  %s1669_s17 = smov 113   ;;  %vm515_vm4 = vcmask 1039360   ;;  %vm443_vm5 = vcmask 924672  }
  0x51   : > { %v1446_v22 = vpack.c.bf16 %v1387_v16, %v1386_v7  ;;  %v1447_v24 = vpack.c.bf16 %v1389_v17, %v1388_v11  ;;  %246 = vst [vmem:[#allocation2 + $0x14] sm:$0xff] %v1879_v23  ;;  %s1670_s22 = smov 15   ;;  %s1671_s23 = smov 1   ;;  %vm308_vm6 = vcmask 908288   ;;  %vm488_vm7 = vcmask 121856  }
  0x52   : > { %s1672_s25 = smov 17   ;;  %s1673_s30 = smov 16   ;;  %vm560_vm8 = vcmask 7168   ;;  %vm354_vm9 = vcmask 138240   ;;  %vm352_vm10 = vcmask 1043456   ;;  %vm411_vm11 = vcmask 130048  }
  0x53   : > { %512 = vrot.lane.b32.xlu0 %v1446_v22, %s1667_s18  ;;  %305 = vrot.lane.b32.xlu1 %v1446_v22, %s1668_s20  ;;  %s1674_s4 = smov 112   ;;  %v725_v35 = vld [vmem:[#allocation2 + $0xc] sm:$0xf]  ;;  %vm765_vm12 = vcmask 916480   ;;  %vm1129_vm13 = vcmask 261120   ;;  %p2223_p11 = scmp.ne.s32.totalorder %s2217_s6, 0 }
  0x54   : > { %v729_v33 = vld [vmem:[#allocation2 + $0x2c] sm:$0xf]  ;;  %v727_v36 = vld [vmem:[#allocation2 + $0x1c] sm:$0xf] }
  0x55   : > { %v375_v25 = vld [vmem:[#allocation2 + $0x28] sm:$0xf]  ;;  %v1890_v26 = vld [vmem:[#allocation2 + $0x20] sm:$0xff]  ;;  %v731_v34 = vld [vmem:[#allocation2 + $0x3c] sm:$0xf] }
  0x56   : > { %v377_v27 = vld [vmem:[#allocation2 + $0x38] sm:$0xf]  ;;  %v1895_v28 = vld [vmem:[#allocation2 + $0x30] sm:$0xff]  ;;  %v371_v29 = vld [vmem:[#allocation2 + $0x8] sm:$0xf] }
  0x57   : > { %440 = vrot.lane.b32.xlu0 %v1447_v24, %s1669_s17  ;;  %662 = vrot.lane.b32.xlu1 %v1446_v22, %s1670_s22  ;;  %v1900_v30 = vld [vmem:[#allocation2] sm:$0xff]  ;;  %v509_v38 = vld [vmem:[#allocation2 + $0x28] sm:$0xf]  ;;  %v511_v43 = vld [vmem:[#allocation2 + $0x38] sm:$0xf] }
  0x58   : > { %v373_v31 = vld [vmem:[#allocation2 + $0x18] sm:$0xf]  ;;  %v1905_v32 = vld [vmem:[#allocation2 + $0x10] sm:$0xff]  ;;  %v505_v46 = vld [vmem:[#allocation2 + $0x8] sm:$0xf] }
  0x59   : > { %v507_v50 = vld [vmem:[#allocation2 + $0x18] sm:$0xf]  ;;  %v432_v52 = vld [vmem:[#allocation2 + $0x28] sm:$0xf] }
  0x5a   : > { %v434_v58 = vld [vmem:[#allocation2 + $0x38] sm:$0xf]  ;;  %v428_v61 = vld [vmem:[#allocation2 + $0x8] sm:$0xf] }
  0x5b   : > { %592 = vrot.lane.b32.xlu0 %v1447_v24, %s1671_s23  ;;  %789 = vrot.lane.b32.xlu1 %v1447_v24, %s1672_s25  ;;  %v430_v2 = vld [vmem:[#allocation2 + $0x18] sm:$0xf]  ;;  %v297_v4 = vld [vmem:[#allocation2 + $0x28] sm:$0xf] }
  0x5c   : > { %v299_v17 = vld [vmem:[#allocation2 + $0x38] sm:$0xf] }
  0x5f   : > { %396 = vrot.lane.b32.xlu1 %v375_v25, %s1673_s30  ;;  %394 = vrot.lane.b32.xlu0 %v1890_v26, %s1673_s30  ;;  %v293_v25 = vld [vmem:[#allocation2 + $0x8] sm:$0xf] }
  0x63   : > { %400 = vrot.lane.b32.xlu1 %v377_v27, %s1673_s30  ;;  %398 = vrot.lane.b32.xlu0 %v1895_v28, %s1673_s30 }
  0x67   : > { %388 = vrot.lane.b32.xlu1 %v371_v29, %s1673_s30  ;;  %386 = vrot.lane.b32.xlu0 %v1900_v30, %s1673_s30 }
  0x6b   : > { %392 = vrot.lane.b32.xlu1 %v373_v31, %s1673_s30  ;;  %390 = vrot.lane.b32.xlu0 %v1905_v32, %s1673_s30 }
  0x6f   : > { %750 = vrot.lane.b32.xlu1 %v729_v33, %s1674_s4  ;;  %748 = vrot.lane.b32.xlu0 %v1851_v12, %s1674_s4  ;;  %v295_v33 = vld [vmem:[#allocation2 + $0x18] sm:$0xf] }
  0x73   : > { %754 = vrot.lane.b32.xlu1 %v731_v34, %s1674_s4  ;;  %752 = vrot.lane.b32.xlu0 %v1864_v18, %s1674_s4  ;;  %v659_v34 = vld [vmem:[#allocation2 + $0x2c] sm:$0xf] }
  0x77   : > { %742 = vrot.lane.b32.xlu1 %v725_v35, %s1674_s4  ;;  %740 = vrot.lane.b32.xlu0 %v1868_v19, %s1674_s4 }
  0x7b   : > { %746 = vrot.lane.b32.xlu1 %v727_v36, %s1674_s4  ;;  %744 = vrot.lane.b32.xlu0 %v1879_v23, %s1674_s4  ;;  %s1275_s4 = scalar_lea.sflag [#allocation6], %s1813_s26 }
  0xc5   : > { %v513_v37 = vpop.permute.xlu0 %512  ;;  %v306_v62 = vpop.permute.xlu1 %305 }
  0xc6   : > { %v514_v39 = vrot.slane %v513_v37, 4  ;;  %v307_v3 = vrot.slane %v306_v62, 4 }
  0xc8   : > { %v516_v40 = vsel %vm515_vm4, %v514_v39, %v513_v37  ;;  %v524_v41 = vmul.bf16 %v514_v39, %v509_v38  ;;  %v526_v44 = vmul.bf16 %v514_v39, %v511_v43  ;;  %v520_v48 = vmul.bf16 %v514_v39, %v505_v46  ;;  %v661_v38 = vld [vmem:[#allocation2 + $0x3c] sm:$0xf]  ;;  %v589_v46 = vld [vmem:[#allocation2 + $0x2c] sm:$0xf] }
  0xc9   : > { %v523_v42 = vmul.bf16 %v516_v40, %v1890_v26  ;;  %v525_v45 = vmul.bf16 %v516_v40, %v1895_v28  ;;  %v441_v47 = vpop.permute.xlu0 %440  ;;  %v519_v49 = vmul.bf16 %v516_v40, %v1900_v30  ;;  %v522_v53 = vmul.bf16 %v514_v39, %v507_v50  ;;  %v663_v27 = vpop.permute.xlu1 %662 }
  0xca   : > { %545 = vrot.lane.b32.xlu1 %v524_v41, %s1671_s23  ;;  %v442_v51 = vrot.slane %v441_v47, 4  ;;  %v521_v54 = vmul.bf16 %v516_v40, %v1905_v32  ;;  %v309_v7 = vsel %vm308_vm6, %v307_v3, %v306_v62  ;;  %v317_v11 = vmul.bf16 %v307_v3, %v297_v4  ;;  %v655_v41 = vld [vmem:[#allocation2 + $0xc] sm:$0xf] }
  0xcb   : > { %543 = vrot.lane.b32.xlu0 %v523_v42, %s1671_s23  ;;  %v316_v16 = vmul.bf16 %v1890_v26, %v309_v7  ;;  %v319_v22 = vmul.bf16 %v307_v3, %v299_v17  ;;  %v318_v24 = vmul.bf16 %v1895_v28, %v309_v7  ;;  %v313_v29 = vmul.bf16 %v307_v3, %v293_v25  ;;  %v1525_v17 = vld [vmem:[#allocation7 + $0x4] ss:$12 sps:$4 sm:$0xff]  }
  0xcc   : > { %v444_v55 = vsel %vm443_vm5, %v442_v51, %v441_v47  ;;  %v452_v56 = vmul.bf16 %v442_v51, %v432_v52  ;;  %v454_v59 = vmul.bf16 %v442_v51, %v434_v58  ;;  %v448_v63 = vmul.bf16 %v442_v51, %v428_v61  ;;  %v587_v61 = vld [vmem:[#allocation2 + $0x1c] sm:$0xf]  ;;  %1168 = vmatprep.mubr.bf16.mxu0 %v1525_v17 }
  0xcd   : > { %v451_v57 = vmul.bf16 %v444_v55, %v1890_v26  ;;  %v453_v60 = vmul.bf16 %v444_v55, %v1895_v28  ;;  %v447_v0 = vmul.bf16 %v444_v55, %v1900_v30  ;;  %v450_v5 = vmul.bf16 %v442_v51, %v430_v2  ;;  %v790_v51 = vpop.permute.xlu1 %789 }
  0xce   : > { %549 = vrot.lane.b32.xlu1 %v526_v44, %s1671_s23  ;;  %v449_v6 = vmul.bf16 %v444_v55, %v1905_v32  ;;  %v312_v31 = vmul.bf16 %v1900_v30, %v309_v7  ;;  %v664_v26 = vrot.slane %v663_v27, 4  ;;  %v315_v35 = vmul.bf16 %v307_v3, %v295_v33  ;;  %v657_v44 = vld [vmem:[#allocation2 + $0x1c] sm:$0xf] }
  0xcf   : > { %547 = vrot.lane.b32.xlu0 %v525_v45, %s1671_s23  ;;  %v314_v28 = vmul.bf16 %v1905_v32, %v309_v7  ;;  %v593_v32 = vpop.permute.xlu0 %592  ;;  %v791_v62 = vrot.slane %v790_v51, 4 }
  0xd0   : > { %v665_v36 = vsel %vm488_vm7, %v664_v26, %v663_v27  ;;  %v673_v37 = vmul.bf16 %v664_v26, %v659_v34  ;;  %v675_v39 = vmul.bf16 %v664_v26, %v661_v38  ;;  %v669_v42 = vmul.bf16 %v664_v26, %v655_v41  ;;  %v782_v27 = vld [vmem:[#allocation2 + $0xc] sm:$0xf]  ;;  %v898_v38 = vld [vmem:[%s2206_s2 + $0x18] sm:$0xff] }
  0xd1   : > { %v672_v30 = vmul.bf16 %v1851_v12, %v665_v36  ;;  %v674_v40 = vmul.bf16 %v1864_v18, %v665_v36  ;;  %v668_v43 = vmul.bf16 %v1868_v19, %v665_v36  ;;  %v594_v45 = vrot.slane %v593_v32, 4 }
  0xd2   : > { %537 = vrot.lane.b32.xlu1 %v520_v48, %s1671_s23  ;;  %v671_v47 = vmul.bf16 %v664_v26, %v657_v44  ;;  %v670_v48 = vmul.bf16 %v1879_v23, %v665_v36  ;;  %v784_v26 = vld [vmem:[#allocation2 + $0x1c] sm:$0xf] }
  0xd3   : > { %535 = vrot.lane.b32.xlu0 %v519_v49, %s1671_s23  ;;  %v595_v49 = vsel %vm560_vm8, %v594_v45, %v593_v32  ;;  %v603_v50 = vmul.bf16 %v594_v45, %v589_v46  ;;  %v1975_v58 = vpop.permute.xlu0 %394  ;;  %v798_v34 = vmul.bf16 %v791_v62, %v784_v26 }
  0xd4   : > { %v602_v52 = vmul.bf16 %v1851_v12, %v595_v49  ;;  %v604_v55 = vmul.bf16 %v1864_v18, %v595_v49  ;;  %v600_v3 = vmul.bf16 %v1879_v23, %v595_v49 }
  0xd6   : > { %541 = vrot.lane.b32.xlu1 %v522_v53, %s1671_s23  ;;  %v591_v53 = vld [vmem:[#allocation2 + $0x3c] sm:$0xf] }
  0xd7   : > { %539 = vrot.lane.b32.xlu0 %v521_v54, %s1671_s23  ;;  %v605_v54 = vmul.bf16 %v594_v45, %v591_v53  ;;  %v1983_v4 = vpop.permute.xlu0 %398 }
  0xda   : > { %473 = vrot.lane.b32.xlu1 %v452_v56, %s1670_s22  ;;  %v585_v56 = vld [vmem:[#allocation2 + $0xc] sm:$0xf] }
  0xdb   : > { %471 = vrot.lane.b32.xlu0 %v451_v57, %s1670_s22  ;;  %v1972_v57 = vpop.permute.xlu1 %396 }
  0xde   : > { %477 = vrot.lane.b32.xlu1 %v454_v59, %s1670_s22  ;;  %v599_v59 = vmul.bf16 %v594_v45, %v585_v56 }
  0xdf   : > { %475 = vrot.lane.b32.xlu0 %v453_v60, %s1670_s22  ;;  %v598_v60 = vmul.bf16 %v1868_v19, %v595_v49  ;;  %v1980_v2 = vpop.permute.xlu1 %400 }
  0xe2   : > { %465 = vrot.lane.b32.xlu1 %v448_v63, %s1670_s22  ;;  %v786_v63 = vld [vmem:[#allocation2 + $0x2c] sm:$0xf] }
  0xe3   : > { %463 = vrot.lane.b32.xlu0 %v447_v0, %s1670_s22  ;;  %v601_v0 = vmul.bf16 %v594_v45, %v587_v61 }
  0xe6   : > { %469 = vrot.lane.b32.xlu1 %v450_v5, %s1670_s22  ;;  %v792_v5 = vsel %vm354_vm9, %v791_v62, %v790_v51 }
  0xe7   : > { %467 = vrot.lane.b32.xlu0 %v449_v6, %s1670_s22  ;;  %v800_v6 = vmul.bf16 %v791_v62, %v786_v63  ;;  %v799_v7 = vmul.bf16 %v1851_v12, %v792_v5  ;;  %v801_v25 = vmul.bf16 %v1864_v18, %v792_v5  ;;  %v795_v33 = vmul.bf16 %v1868_v19, %v792_v5  ;;  %v896_v19 = vld [vmem:[%s2206_s2 + $0x8] sm:$0xff] }
  0xe8   : > { %v797_v18 = vmul.bf16 %v1879_v23, %v792_v5  ;;  %v897_v23 = vld [vmem:[%s2206_s2 + $0x10] sm:$0xff] }
  0xea   : > { %338 = vrot.lane.b32.xlu1 %v317_v11, %s1672_s25  ;;  %v788_v11 = vld [vmem:[#allocation2 + $0x3c] sm:$0xf] }
  0xeb   : > { %336 = vrot.lane.b32.xlu0 %v316_v16, %s1672_s25  ;;  %v1990_v16 = vpop.permute.xlu1 %388 }
  0xee   : > { %342 = vrot.lane.b32.xlu1 %v319_v22, %s1672_s25  ;;  %v1993_v22 = vpop.permute.xlu0 %386 }
  0xef   : > { %340 = vrot.lane.b32.xlu0 %v318_v24, %s1672_s25  ;;  %v802_v24 = vmul.bf16 %v791_v62, %v788_v11  ;;  %v1998_v12 = vpop.permute.xlu1 %392 }
  0xf2   : > { %330 = vrot.lane.b32.xlu1 %v313_v29, %s1672_s25  ;;  %v796_v29 = vmul.bf16 %v791_v62, %v782_v27 }
  0xf3   : > { %328 = vrot.lane.b32.xlu0 %v312_v31, %s1672_s25  ;;  %v2000_v31 = vpop.permute.xlu0 %390 }
  0xf6   : > { %334 = vrot.lane.b32.xlu1 %v315_v35, %s1672_s25  ;;  %v2006_v35 = vpop.permute.xlu1 %750 }
  0xf7   : > { %332 = vrot.lane.b32.xlu0 %v314_v28, %s1672_s25  ;;  %v2009_v28 = vpop.permute.xlu0 %748 }
  0xfa   : > { %694 = vrot.lane.b32.xlu1 %v673_v37, %s1669_s17  ;;  %v2012_v36 = vpop.permute.xlu1 %754  ;;  %v895_v37 = vld [vmem:[%s2206_s2] sm:$0xff] }
  0xfb   : > { %692 = vrot.lane.b32.xlu0 %v672_v30, %s1669_s17  ;;  %v2020_v30 = vpop.permute.xlu0 %752 }
  0xfe   : > { %698 = vrot.lane.b32.xlu1 %v675_v39, %s1669_s17  ;;  %v2028_v39 = vpop.permute.xlu1 %742 }
  0xff   : > { %696 = vrot.lane.b32.xlu0 %v674_v40, %s1669_s17  ;;  %v2030_v40 = vpop.permute.xlu0 %740 }
 0x102   : > { %686 = vrot.lane.b32.xlu1 %v669_v42, %s1669_s17  ;;  %v2032_v41 = vpop.permute.xlu1 %746 }
 0x103   : > { %684 = vrot.lane.b32.xlu0 %v668_v43, %s1669_s17  ;;  %v2034_v32 = vpop.permute.xlu0 %744 }
 0x106   : > { %690 = vrot.lane.b32.xlu1 %v671_v47, %s1669_s17 }
 0x107   : > { %688 = vrot.lane.b32.xlu0 %v670_v48, %s1669_s17  ;;  %s1448_s17 = sshll.u32 %s1718_s16, 10  ;;  %s1675_s16 = smov [#allocation9]  }
 0x108   : > { %s2159_s25 = scalar_lea.hbm %s2207_s3, %s1448_s17 }
 0x10a   : > { %624 = vrot.lane.b32.xlu1 %v603_v50, %s1667_s18 }
 0x10b   : > { %622 = vrot.lane.b32.xlu0 %v602_v52, %s1667_s18 }
 0x10e   : > { %628 = vrot.lane.b32.xlu1 %v605_v54, %s1667_s18 }
 0x10f   : > { %626 = vrot.lane.b32.xlu0 %v604_v55, %s1667_s18 }
 0x112   : > { %616 = vrot.lane.b32.xlu1 %v599_v59, %s1667_s18 }
 0x113   : > { %614 = vrot.lane.b32.xlu0 %v598_v60, %s1667_s18 }
 0x116   : > { %620 = vrot.lane.b32.xlu1 %v601_v0, %s1667_s18 }
 0x117   : > { %618 = vrot.lane.b32.xlu0 %v600_v3, %s1667_s18 }
 0x11a   : > { %821 = vrot.lane.b32.xlu1 %v800_v6, %s1668_s20 }
 0x11b   : > { %819 = vrot.lane.b32.xlu0 %v799_v7, %s1668_s20 }
 0x11e   : > { %825 = vrot.lane.b32.xlu1 %v802_v24, %s1668_s20 }
 0x11f   : > { %823 = vrot.lane.b32.xlu0 %v801_v25, %s1668_s20 }
 0x122   : > { %813 = vrot.lane.b32.xlu1 %v796_v29, %s1668_s20 }
 0x123   : > { %811 = vrot.lane.b32.xlu0 %v795_v33, %s1668_s20 }
 0x126   : > { %817 = vrot.lane.b32.xlu1 %v798_v34, %s1668_s20 }
 0x127   : > { %815 = vrot.lane.b32.xlu0 %v797_v18, %s1668_s20  ;;  %s2138_s20 = scalar_lea.vmem [#allocation9], %s1379_s27 }
 0x128   : > { %s1288_s27 = sshll.u32 %s2138_s20, 4  ;;  %s2153_s27 = int_to_ptr.vmem [resolvable:$true] %s1288_s27 }
 0x129   : > { %s1589_s7 = scalar_lea.vmem %s2153_s27, 1024 }
 0x12a   : > { %906 = vperm.xlu1 %1522, %v896_v19   ;;  %p1590_p3 = scmp.ne.s32.totalorder %s2153_s27, %s1589_s7 }
 0x12b   : > { %901 = vperm.xlu0 %1521, %v895_v37  }
 0x12c   : > { %p1591_p7 = pnand %p1590_p3, %p2223_p11 }
 0x12e   : > { %911 = vperm.xlu1 %1522, %v897_v23   ;;  %v407_v23 = vrot.slane %v1972_v57, 4  ;;  %p1592_p12 = pneg %p1591_p7 }
 0x12f   : > { %916 = vperm.xlu0 %1521, %v898_v38   ;;  %v406_v38 = vrot.slane %v1975_v58, 4 }
 0x131   : > { %v415_v57 = vsel %vm352_vm10, %v406_v38, %v407_v23  ;;  %v761_v38 = vrot.slane %v2006_v35, 4 }
 0x13c   : > { %v546_v42 = vpop.permute.xlu1 %545 }
 0x13d   : > { %v544_v43 = vpop.permute.xlu0 %543  ;;  %v556_v44 = vrot.slane %v546_v42, 4  ;;  %v409_v42 = vrot.slane %v1980_v2, 4  ;;  %v403_v2 = vrot.slane %v1990_v16, 4 }
 0x13e   : > { %v555_v45 = vrot.slane %v544_v43, 4 }
 0x140   : > { %v550_v46 = vpop.permute.xlu1 %549  ;;  %v564_v50 = vsel %vm352_vm10, %v555_v45, %v556_v44 }
 0x141   : > { %v558_v47 = vrot.slane %v550_v46, 4  ;;  %v548_v48 = vpop.permute.xlu0 %547  ;;  %v565_v54 = vsel %vm560_vm8, %v544_v43, %v564_v50  ;;  %v408_v43 = vrot.slane %v1983_v4, 4 }
 0x142   : > { %v557_v49 = vrot.slane %v548_v48, 4 }
 0x144   : > { %v538_v51 = vpop.permute.xlu1 %537  ;;  %v566_v52 = vsel %vm352_vm10, %v557_v49, %v558_v47 }
 0x145   : > { %v536_v53 = vpop.permute.xlu0 %535  ;;  %v567_v55 = vsel %vm560_vm8, %v548_v48, %v566_v52  ;;  %v552_v56 = vrot.slane %v538_v51, 4 }
 0x146   : > { %v551_v59 = vrot.slane %v536_v53, 4  ;;  %v1413_v60 = vcombine.high %v565_v54, %v567_v55  ;;  %v1412_v61 = vcombine.low %v565_v54, %v567_v55  ;;  %v402_v55 = vrot.slane %v1993_v22, 4 }
 0x148   : > { %v542_v62 = vpop.permute.xlu1 %541  ;;  %1136 = vmatprep.subr.bf16.mxu0 %v1413_v60  ;;  %v559_v3 = vsel %vm352_vm10, %v551_v59, %v552_v56  ;;  %v405_v56 = vrot.slane %v1998_v12, 4  ;;  %v404_v59 = vrot.slane %v2000_v31, 4 }
 0x149   : > { %v554_v63 = vrot.slane %v542_v62, 4  ;;  %1137 = vmatpush1.bf16.msra.mxu0 %v1412_v61  ;;  %v540_v0 = vpop.permute.xlu0 %539  ;;  %v561_v11 = vsel %vm560_vm8, %v536_v53, %v559_v3  ;;  %v417_v53 = vsel %vm352_vm10, %v408_v43, %v409_v42  ;;  %v760_v42 = vrot.slane %v2009_v28, 4 }
 0x14a   : > { %v553_v5 = vrot.slane %v540_v0, 4  ;;  %v418_v16 = vsel %vm411_vm11, %v1983_v4, %v417_v53  ;;  %v413_v12 = vsel %vm352_vm10, %v404_v59, %v405_v56  ;;  %v759_v56 = vrot.slane %v2032_v41, 4 }
 0x14b   : > { %v414_v4 = vsel %vm411_vm11, %v2000_v31, %v413_v12  ;;  %v758_v59 = vrot.slane %v2034_v32, 4 }
 0x14c   : > { %v562_v6 = vsel %vm352_vm10, %v553_v5, %v554_v63  ;;  %v474_v7 = vpop.permute.xlu1 %473 }
 0x14d   : > { %v563_v17 = vsel %vm560_vm8, %v540_v0, %v562_v6  ;;  %v472_v24 = vpop.permute.xlu0 %471  ;;  %v484_v29 = vrot.slane %v474_v7, 4  ;;  %v416_v0 = vsel %vm411_vm11, %v1975_v58, %v415_v57  ;;  %v410_v6 = vsel %vm352_vm10, %v402_v55, %v403_v2 }
 0x14e   : > { %v1410_v25 = vcombine.low %v561_v11, %v563_v17  ;;  %v1411_v27 = vcombine.high %v561_v11, %v563_v17  ;;  %v483_v33 = vrot.slane %v472_v24, 4  ;;  %v412_v58 = vsel %vm411_vm11, %v1993_v22, %v410_v6 }
 0x14f   : > { %v1403_v23 = vcombine.high %v412_v58, %v414_v4  ;;  %v756_v2 = vrot.slane %v2030_v40, 4  ;;  %v767_v12 = vsel %vm352_vm10, %v758_v59, %v759_v56 }
 0x150   : > { %v478_v26 = vpop.permute.xlu1 %477  ;;  %1138 = vmatprep.subr.bf16.mxu0 %v1411_v27  ;;  %v492_v19 = vsel %vm352_vm10, %v483_v33, %v484_v29  ;;  %v1405_v27 = vcombine.high %v416_v0, %v418_v16 }
 0x151   : > { %v486_v34 = vrot.slane %v478_v26, 4  ;;  %1139 = vmatpush1.bf16.msra.mxu0 %v1410_v25  ;;  %v476_v18 = vpop.permute.xlu0 %475  ;;  %v493_v46 = vsel %vm488_vm7, %v472_v24, %v492_v19 }
 0x152   : > { %v485_v37 = vrot.slane %v476_v18, 4 }
 0x154   : > { %v494_v44 = vsel %vm352_vm10, %v485_v37, %v486_v34  ;;  %v466_v45 = vpop.permute.xlu1 %465  ;;  %v1404_v37 = vcombine.low %v416_v0, %v418_v16 }
 0x155   : > { %v495_v47 = vsel %vm488_vm7, %v476_v18, %v494_v44  ;;  %v464_v48 = vpop.permute.xlu0 %463  ;;  %v480_v51 = vrot.slane %v466_v45, 4  ;;  %v763_v44 = vrot.slane %v2012_v36, 4  ;;  %v762_v45 = vrot.slane %v2020_v30, 4 }
 0x156   : > { %v1408_v49 = vcombine.low %v493_v46, %v495_v47  ;;  %v1409_v50 = vcombine.high %v493_v46, %v495_v47  ;;  %v479_v52 = vrot.slane %v464_v48, 4  ;;  %v757_v36 = vrot.slane %v2028_v39, 4 }
 0x157   : > { %v771_v53 = vsel %vm352_vm10, %v762_v45, %v763_v44 }
 0x158   : > { %v470_v54 = vpop.permute.xlu1 %469  ;;  %1140 = vmatprep.subr.bf16.mxu0 %v1409_v50  ;;  %v487_v62 = vsel %vm352_vm10, %v479_v52, %v480_v51  ;;  %v1402_v50 = vcombine.low %v412_v58, %v414_v4  ;;  %v769_v51 = vsel %vm352_vm10, %v760_v42, %v761_v38  ;;  %v772_v16 = vsel %vm765_vm12, %v2020_v30, %v771_v53 }
 0x159   : > { %v482_v60 = vrot.slane %v470_v54, 4  ;;  %1141 = vmatpush1.bf16.msra.mxu0 %v1408_v49  ;;  %v468_v61 = vpop.permute.xlu0 %467  ;;  %v489_v7 = vsel %vm488_vm7, %v464_v48, %v487_v62  ;;  %v770_v39 = vsel %vm765_vm12, %v2009_v28, %v769_v51  ;;  %v764_v6 = vsel %vm352_vm10, %v756_v2, %v757_v36 }
 0x15a   : > { %v481_v63 = vrot.slane %v468_v61, 4  ;;  %v766_v28 = vsel %vm765_vm12, %v2030_v40, %v764_v6  ;;  %v768_v30 = vsel %vm765_vm12, %v2034_v32, %v767_v12 }
 0x15b   : > { %v1426_v32 = vcombine.low %v766_v28, %v768_v30 }
 0x15c   : > { %v490_v3 = vsel %vm352_vm10, %v481_v63, %v482_v60  ;;  %v339_v5 = vpop.permute.xlu1 %338 }
 0x15d   : > { %v491_v11 = vsel %vm488_vm7, %v468_v61, %v490_v3  ;;  %v337_v17 = vpop.permute.xlu0 %336  ;;  %v349_v29 = vrot.slane %v339_v5, 4 }
 0x15e   : > { %v1406_v24 = vcombine.low %v489_v7, %v491_v11  ;;  %v1407_v25 = vcombine.high %v489_v7, %v491_v11  ;;  %v348_v33 = vrot.slane %v337_v17, 4 }
 0x160   : > { %v343_v26 = vpop.permute.xlu1 %342  ;;  %1142 = vmatprep.subr.bf16.mxu0 %v1407_v25  ;;  %v358_v22 = vsel %vm352_vm10, %v348_v33, %v349_v29  ;;  %v1428_v33 = vcombine.low %v770_v39, %v772_v16 }
 0x161   : > { %v351_v34 = vrot.slane %v343_v26, 4  ;;  %1143 = vmatpush1.bf16.msra.mxu0 %v1406_v24  ;;  %v341_v18 = vpop.permute.xlu0 %340  ;;  %v359_v35 = vsel %vm354_vm9, %v337_v17, %v358_v22  ;;  %v1429_v17 = vcombine.high %v770_v39, %v772_v16  ;;  %v1427_v26 = vcombine.high %v766_v28, %v768_v30 }
 0x162   : > { %v350_v19 = vrot.slane %v341_v18, 4  ;;  %1144 = vmatprep.subr.bf16.mxu0 %v1405_v27  ;;  %v1531_v30 = vpack.c.bf16 %v1854_v13, %v1844_v9 }
 0x164   : > { %v360_v43 = vsel %vm352_vm10, %v350_v19, %v351_v34  ;;  %v331_v31 = vpop.permute.xlu1 %330 }
 0x165   : > { %v361_v46 = vsel %vm354_vm9, %v341_v18, %v360_v43  ;;  %1145 = vmatpush1.bf16.msra.mxu0 %v1404_v37  ;;  %v329_v47 = vpop.permute.xlu0 %328  ;;  %v345_v48 = vrot.slane %v331_v31, 4 }
 0x166   : > { %v344_v49 = vrot.slane %v329_v47, 4  ;;  %1146 = vmatprep.subr.bf16.mxu0 %v1403_v23  ;;  %v1401_v52 = vcombine.high %v359_v35, %v361_v46  ;;  %v1400_v62 = vcombine.low %v359_v35, %v361_v46 }
 0x168   : > { %v335_v57 = vpop.permute.xlu1 %334  ;;  %v353_v60 = vsel %vm352_vm10, %v344_v49, %v345_v48 }
 0x169   : > { %v347_v54 = vrot.slane %v335_v57, 4  ;;  %1147 = vmatpush1.bf16.msra.mxu0 %v1402_v50  ;;  %v333_v55 = vpop.permute.xlu0 %332  ;;  %v355_v3 = vsel %vm354_vm9, %v329_v47, %v353_v60 }
 0x16a   : > { %v346_v61 = vrot.slane %v333_v55, 4  ;;  %1148 = vmatprep.subr.bf16.mxu0 %v1401_v52 }
 0x16c   : > { %v356_v63 = vsel %vm352_vm10, %v346_v61, %v347_v54  ;;  %v695_v0 = vpop.permute.xlu1 %694 }
 0x16d   : > { %v357_v41 = vsel %vm354_vm9, %v333_v55, %v356_v63  ;;  %1149 = vmatpush1.bf16.msra.mxu0 %v1400_v62  ;;  %v693_v5 = vpop.permute.xlu0 %692  ;;  %v705_v24 = vrot.slane %v695_v0, 4 }
 0x16e   : > { %v1398_v7 = vcombine.low %v355_v3, %v357_v41  ;;  %v1399_v11 = vcombine.high %v355_v3, %v357_v41  ;;  %v704_v25 = vrot.slane %v693_v5, 4 }
 0x170   : > { %v699_v27 = vpop.permute.xlu1 %698  ;;  %1150 = vmatprep.subr.bf16.mxu0 %v1399_v11  ;;  %v712_v34 = vsel %vm352_vm10, %v704_v25, %v705_v24 }
 0x171   : > { %v707_v58 = vrot.slane %v699_v27, 4  ;;  %1151 = vmatpush1.bf16.msra.mxu0 %v1398_v7  ;;  %v697_v4 = vpop.permute.xlu0 %696  ;;  %v713_v42 = vsel %vm443_vm5, %v693_v5, %v712_v34 }
 0x172   : > { %v706_v29 = vrot.slane %v697_v4, 4  ;;  %1152 = vmatprep.subr.bf16.mxu0 %v1429_v17 }
 0x174   : > { %v714_v18 = vsel %vm352_vm10, %v706_v29, %v707_v58  ;;  %v687_v19 = vpop.permute.xlu1 %686 }
 0x175   : > { %v715_v37 = vsel %vm443_vm5, %v697_v4, %v714_v18  ;;  %1153 = vmatpush2.bf16.msra.mxu0 %v1428_v33  ;;  %v685_v23 = vpop.permute.xlu0 %684  ;;  %v701_v40 = vrot.slane %v687_v19, 4  ;;  %v1532_v19 = vpack.c.bf16 %v1847_v10, %v1841_v8 }
 0x176   : > { %v700_v38 = vrot.slane %v685_v23, 4  ;;  %1154 = vmatprep.subr.bf16.mxu0 %v1427_v26  ;;  %v1425_v22 = vcombine.high %v713_v42, %v715_v37  ;;  %v1424_v47 = vcombine.low %v713_v42, %v715_v37 }
 0x178   : > { %v691_v43 = vpop.permute.xlu1 %690  ;;  %v708_v45 = vsel %vm352_vm10, %v700_v38, %v701_v40 }
 0x179   : > { %v703_v31 = vrot.slane %v691_v43, 4  ;;  %1155 = vmatpush2.bf16.msra.mxu0 %v1426_v32  ;;  %v689_v44 = vpop.permute.xlu0 %688  ;;  %v709_v50 = vsel %vm443_vm5, %v685_v23, %v708_v45  ;;  %v1533_v23 = vpack.c.bf16 %v1874_v21, %v1860_v15  ;;  %v1523_v21 = vld [vmem:[#allocation7] ss:$12 sps:$4 sm:$0xff]  }
 0x17a   : > { %v702_v46 = vrot.slane %v689_v44, 4  ;;  %1156 = vmatprep.subr.bf16.mxu0 %v1425_v22  ;;  %v1534_v22 = vpack.c.bf16 %v1871_v20, %v1857_v14 }
 0x17c   : > { %v710_v48 = vsel %vm352_vm10, %v702_v46, %v703_v31  ;;  %v625_v49 = vpop.permute.xlu1 %624  ;;  %v1526_v46 = vld [vmem:[#allocation7 + $0x1c] ss:$12 sps:$4 sm:$0xff]  }
 0x17d   : > { %v711_v35 = vsel %vm443_vm5, %v689_v44, %v710_v48  ;;  %1157 = vmatpush2.bf16.msra.mxu0 %v1424_v47  ;;  %v623_v51 = vpop.permute.xlu0 %622  ;;  %v635_v53 = vrot.slane %v625_v49, 4 }
 0x17e   : > { %v1422_v52 = vcombine.low %v709_v50, %v711_v35  ;;  %v1423_v57 = vcombine.high %v709_v50, %v711_v35  ;;  %v634_v36 = vrot.slane %v623_v51, 4 }
 0x180   : > { %v629_v2 = vpop.permute.xlu1 %628  ;;  %1158 = vmatprep.subr.bf16.mxu0 %v1423_v57  ;;  %v642_v56 = vsel %vm352_vm10, %v634_v36, %v635_v53  ;;  %v1530_v57 = vld [vmem:[#allocation7 + $0x20] ss:$12 sps:$4 sm:$0xff]  }
 0x181   : > { %v637_v54 = vrot.slane %v629_v2, 4  ;;  %1159 = vmatpush2.bf16.msra.mxu0 %v1422_v52  ;;  %v627_v55 = vpop.permute.xlu0 %626  ;;  %v643_v62 = vsel %vm515_vm4, %v623_v51, %v642_v56  ;;  %v1528_v51 = vld [vmem:[#allocation7 + $0x18] ss:$12 sps:$4 sm:$0xff]   ;;  %v1529_v52 = vld [vmem:[#allocation7 + $0x8] ss:$12 sps:$4 sm:$0xff]  }
 0x182   : > { %v636_v59 = vrot.slane %v627_v55, 4 }
 0x184   : > { %v644_v60 = vsel %vm352_vm10, %v636_v59, %v637_v54  ;;  %v617_v61 = vpop.permute.xlu1 %616 }
 0x185   : > { %v645_v63 = vsel %vm515_vm4, %v627_v55, %v644_v60  ;;  %v615_v0 = vpop.permute.xlu0 %614  ;;  %v631_v3 = vrot.slane %v617_v61, 4 }
 0x186   : > { %v1420_v39 = vcombine.low %v643_v62, %v645_v63  ;;  %v1421_v16 = vcombine.high %v643_v62, %v645_v63  ;;  %v630_v41 = vrot.slane %v615_v0, 4 }
 0x188   : > { %v621_v5 = vpop.permute.xlu1 %620  ;;  %1160 = vmatprep.subr.bf16.mxu0 %v1421_v16  ;;  %v638_v7 = vsel %vm352_vm10, %v630_v41, %v631_v3 }
 0x189   : > { %v633_v6 = vrot.slane %v621_v5, 4  ;;  %1161 = vmatpush2.bf16.msra.mxu0 %v1420_v39  ;;  %v619_v12 = vpop.permute.xlu0 %618  ;;  %v639_v25 = vsel %vm515_vm4, %v615_v0, %v638_v7  ;;  %v1250_v39 = vld [vmem:[%s1819_s29] sm:$0xff] }
 0x18a   : > { %v632_v11 = vrot.slane %v619_v12, 4 }
 0x18c   : > { %v640_v17 = vsel %vm352_vm10, %v632_v11, %v633_v6  ;;  %v822_v24 = vpop.permute.xlu1 %821 }
 0x18d   : > { %v641_v27 = vsel %vm515_vm4, %v619_v12, %v640_v17  ;;  %v820_v28 = vpop.permute.xlu0 %819  ;;  %v832_v29 = vrot.slane %v822_v24, 4  ;;  %v1251_v12 = vld [vmem:[%s1819_s29 + $0x8] sm:$0xff] }
 0x18e   : > { %v1418_v58 = vcombine.low %v639_v25, %v641_v27  ;;  %v1419_v4 = vcombine.high %v639_v25, %v641_v27  ;;  %v831_v33 = vrot.slane %v820_v28, 4 }
 0x190   : > { %v826_v26 = vpop.permute.xlu1 %825  ;;  %1162 = vmatprep.subr.bf16.mxu0 %v1419_v4  ;;  %v839_v40 = vsel %vm352_vm10, %v831_v33, %v832_v29  ;;  %v1253_v33 = vld [vmem:[%s1819_s29 + $0x18] sm:$0xff] }
 0x191   : > { %v834_v34 = vrot.slane %v826_v26, 4  ;;  %1163 = vmatpush2.bf16.msra.mxu0 %v1418_v58  ;;  %v824_v18 = vpop.permute.xlu0 %823  ;;  %v840_v32 = vsel %vm308_vm6, %v820_v28, %v839_v40  ;;  %v1252_v28 = vld [vmem:[%s1819_s29 + $0x10] sm:$0xff] }
 0x192   : > { %v833_v37 = vrot.slane %v824_v18, 4  ;;  %1164 = vmatprep.subr.bf16.mxu0 %v1531_v30 }
 0x194   : > { %v814_v9 = vpop.permute.xlu1 %813  ;;  %v841_v13 = vsel %vm352_vm10, %v833_v37, %v834_v34 }
 0x195   : > { %1165 = vmatpush2.bf16.msra.mxu0 %v1532_v19  ;;  %v812_v38 = vpop.permute.xlu0 %811  ;;  %v842_v42 = vsel %vm308_vm6, %v824_v18, %v841_v13  ;;  %v828_v8 = vrot.slane %v814_v9, 4  ;;  %v1254_v9 = vld [vmem:[%s1819_s29 + $0x20] sm:$0xff] }
 0x196   : > { %v827_v10 = vrot.slane %v812_v38, 4  ;;  %1166 = vmatprep.subr.bf16.mxu0 %v1533_v23  ;;  %v1433_v43 = vcombine.high %v840_v32, %v842_v42  ;;  %v1432_v31 = vcombine.low %v840_v32, %v842_v42 }
 0x198   : > { %v818_v15 = vpop.permute.xlu1 %817  ;;  %1201 = vmatprep.subr.bf16.mxu1 %v1433_v43  ;;  %v835_v47 = vsel %vm352_vm10, %v827_v10, %v828_v8  ;;  %v1255_v8 = vld [vmem:[%s1819_s29 + $0x28] sm:$0xff] }
 0x199   : > { %v830_v44 = vrot.slane %v818_v15, 4  ;;  %1167 = vmatpush2.bf16.msra.mxu0 %v1534_v22  ;;  %1202 = vmatpush1.bf16.msra.mxu1 %v1432_v31  ;;  %v816_v45 = vpop.permute.xlu0 %815  ;;  %v836_v14 = vsel %vm308_vm6, %v812_v38, %v835_v47 }
 0x19a   : > { %v829_v48 = vrot.slane %v816_v45, 4 }
 0x19c   : > { %v837_v49 = vsel %vm352_vm10, %v829_v48, %v830_v44  ;;  %1169 = vmatmul.mubr.bf16.vlgmr.msra.gmra.mxu0 %v1523_v21  ;;  %v1256_v44 = vld [vmem:[%s1819_s29 + $0x30] sm:$0xff] }
 0x19d   : > { %v838_v20 = vsel %vm308_vm6, %v816_v45, %v837_v49  ;;  %1178 = vmatprep.mubr.bf16.mxu0 %v1526_v46  ;;  %v1257_v49 = vld [vmem:[%s1819_s29 + $0x38] sm:$0xff]  ;;  %s1593_s29 = sshll.u32 %s1675_s16, 4  ;;  %s1594_s29 = int_to_ptr.vmem [resolvable:$false] %s1593_s29 }
 0x19e   : > { %v1430_v50 = vcombine.low %v836_v14, %v838_v20  ;;  %v1431_v35 = vcombine.high %v836_v14, %v838_v20  ;;  %s1595_s8 = scalar_lea.vmem %s1594_s29, 2048  ;;  %p1596_p10 = scmp.lt.s32.totalorder %s2153_s27, %s1594_s29 }
 0x19f   : > { %p1597_p2 = scmp.lt.s32.totalorder %s1595_s8, %s1589_s7 }
 0x1a0   : > { %1203 = vmatprep.subr.bf16.mxu1 %v1431_v35 }
 0x1a1   : > { %1204 = vmatpush1.bf16.msra.mxu1 %v1430_v50  ;;  %p1598_p13 = por %p1597_p2, %p1596_p10 }
 0x1a3   : > { %p1599_p0 = pnand %p1598_p13, %p1592_p12 }
 0x1a4   : > { %1179 = vmatmul.mubr.bf16.gmra.mxu0 %v1528_v51  ;;  %1434 = vmatmul.mubr.msk.bf16.vlgmr.msra.gmra.mxu1 %vm1129_vm13, %v1529_v52 }
 0x1a5   : > { %1231 = vmatprep.mubr.bf16.mxu1 %v1665_v1  ;;  %v907_v55 = vpop.permute.xlu1 %906 }
 0x1a6   : > { %v902_v2 = vpop.permute.xlu0 %901 }
 0x1a9   : > { %v912_v0 = vpop.permute.xlu1 %911 }
 0x1aa   : > { %v917_v26 = vpop.permute.xlu0 %916 }
 0x1ac   : > { %1435 = vmatmul.mubr.msk.bf16.gmra.mxu1 %vm1129_vm13, %v1530_v57 }
 0x25c   : > { %v1170_v53 = vpop.f32.mrf.mxu0 }
 0x25d   : > { %v1171_v56 = vadd.f32 %v1170_v53, %v902_v2 }
 0x25e   : > { %v1172_v36 = vpop.f32.mrf.mxu0 }
 0x25f   : > { %v1173_v62 = vadd.f32 %v1172_v36, %v902_v2 }
 0x260   : > { %v1174_v54 = vpop.f32.mrf.mxu0 }
 0x261   : > { %v1175_v3 = vadd.f32 %v1174_v54, %v907_v55 }
 0x262   : > { %v1176_v59 = vpop.f32.mrf.mxu0 }
 0x263   : > { %v1177_v6 = vadd.f32 %v1176_v59, %v907_v55 }
 0x264   : > { %v1180_v60 = vpop.f32.mrf.mxu0  ;;  %v1223_v61 = vpop.f32.mrf.mxu1 }
 0x265   : > { %v1224_v63 = vadd.f32 %v1223_v61, %v1171_v56  ;;  %v1181_v25 = vadd.f32 %v1180_v60, %v912_v0 }
 0x266   : > { %v1182_v16 = vpop.f32.mrf.mxu0  ;;  %v1225_v1 = vpop.f32.mrf.mxu1 }
 0x267   : > { %v1242_v41 = vmax.f32 %v1224_v63, 0.0  ;;  %v1226_v5 = vadd.f32 %v1225_v1, %v1173_v62  ;;  %v1183_v19 = vadd.f32 %v1182_v16, %v912_v0 }
 0x268   : > { %v1227_v7 = vpop.f32.mrf.mxu1  ;;  %v1184_v27 = vpop.f32.mrf.mxu0 }
 0x269   : > { %v1258_v11 = vadd.f32 %v1250_v39, %v1242_v41  ;;  %v1243_v17 = vmax.f32 %v1226_v5, 0.0  ;;  %v1228_v24 = vadd.f32 %v1227_v7, %v1175_v3  ;;  %v1185_v32 = vadd.f32 %v1184_v27, %v917_v26 }
 0x26a   : > { %v1229_v30 = vpop.f32.mrf.mxu1  ;;  %v1186_v40 = vpop.f32.mrf.mxu0 }
 0x26b   : > { %1266 = vst [vmem:[%s2138_s20] sm:$0xff] %v1258_v11  ;;  %v1259_v58 = vadd.f32 %v1251_v12, %v1243_v17  ;;  %v1244_v4 = vmax.f32 %v1228_v24, 0.0  ;;  %v1230_v29 = vadd.f32 %v1229_v30, %v1177_v6  ;;  %v1187_v43 = vadd.f32 %v1186_v40, %v917_v26 }
 0x26c   : > { %v1233_v34 = vpop.f32.mrf.mxu1 }
 0x26d   : > { %1267 = vst [vmem:[%s2138_s20 + $0x8] sm:$0xff] %v1259_v58  ;;  %v1260_v18 = vadd.f32 %v1252_v28, %v1244_v4  ;;  %v1245_v37 = vmax.f32 %v1230_v29, 0.0  ;;  %v1234_v23 = vadd.f32 %v1233_v34, %v1181_v25 }
 0x26e   : > { %v1235_v13 = vpop.f32.mrf.mxu1 }
 0x26f   : > { %1268 = vst [vmem:[%s2138_s20 + $0x10] sm:$0xff] %v1260_v18  ;;  %v1261_v38 = vadd.f32 %v1253_v33, %v1245_v37  ;;  %v1246_v42 = vmax.f32 %v1234_v23, 0.0  ;;  %v1236_v22 = vadd.f32 %v1235_v13, %v1183_v19 }
 0x270   : > { %v1237_v10 = vpop.f32.mrf.mxu1 }
 0x271   : > { %1269 = vst [vmem:[%s2138_s20 + $0x18] sm:$0xff] %v1261_v38  ;;  %v1262_v31 = vadd.f32 %v1254_v9, %v1246_v42  ;;  %v1247_v15 = vmax.f32 %v1236_v22, 0.0  ;;  %v1238_v21 = vadd.f32 %v1237_v10, %v1185_v32 }
 0x272   : > { %v1239_v45 = vpop.f32.mrf.mxu1 }
 0x273   : > { %1270 = vst [vmem:[%s2138_s20 + $0x20] sm:$0xff] %v1262_v31  ;;  %v1263_v46 = vadd.f32 %v1255_v8, %v1247_v15  ;;  %v1248_v47 = vmax.f32 %v1238_v21, 0.0  ;;  %v1240_v48 = vadd.f32 %v1239_v45, %v1187_v43 }
 0x275   : > { %1271 = vst [vmem:[%s2138_s20 + $0x28] sm:$0xff] %v1263_v46  ;;  %v1264_v14 = vadd.f32 %v1256_v44, %v1248_v47  ;;  %v1249_v20 = vmax.f32 %v1240_v48, 0.0 }
 0x277   : > { %1272 = vst [vmem:[%s2138_s20 + $0x30] sm:$0xff] %v1264_v14  ;;  %v1265_v50 = vadd.f32 %v1257_v49, %v1249_v20 }
 0x279   : > { %1273 = vst [vmem:[%s2138_s20 + $0x38] sm:$0xff] %v1265_v50 }
 0x27a   : > { %1602 = shalt.err (!%p1599_p0)
}
 0x27b   : > { %s1603_s9 = scalar_lea.hbm %s2159_s25, 1024  ;;  %s1607_s21 = scalar_lea.hbm %s2207_s3, 2048 }
 0x27c   : > { %p1604_p5 = scmp.ne.s32.totalorder %s2159_s25, %s1603_s9  ;;  %p1608_p4 = scmp.lt.s32.totalorder %s2159_s25, %s2207_s3 }
 0x27d   : > { %p1609_p6 = scmp.lt.s32.totalorder %s1607_s21, %s1603_s9 }
 0x27e   : > { %p1605_p9 = pnand %p1604_p5, %p2223_p11 }
 0x27f   : > { %p1610_p8 = por %p1609_p6, %p1608_p4 }
 0x280   : > { %p1606_p1 = pneg %p1605_p9 }
 0x282   : > { %p1611_p3 = pnand %p1610_p8, %p1606_p1 }
 0x284   : > { %1614 = shalt.err (!%p1611_p3)
}
 0x285   : > { %s1676_s20 = smov 256  }
 0x286   : > { %1455 = dma.vmem_to_hbm [thread:$0]  (%p2223_p11), %s2153_s27, 1024, %s2159_s25, %s1275_s4, %s1676_s20, %s1676_s20, %s1673_s30  }
 0x287 PF: > { %s1303_s17 = sand.u32 1, %s1645_s12   ;;  %p2224_p7 = scmp.ne.s32.totalorder %s2213_s19, 0 }
 0x288   : > { %p2225_p12 = scmp.ge.s32.totalorder %s1657_s15, 2  ;;  %s1304_s22 = scalar_lea.sflag [#allocation6], %s1303_s17 }
 0x28a   : > { %p1466_p10 = pnand %p2225_p12, %p2224_p7 }
 0x28c   : > { %p1467_p2 = pneg %p1466_p10 }
 0x28e   : > { %1640 = dma.done.wait (%p1467_p2), %s1304_s22, 1024  }
 0x28f   : > { %1642 = vsyncadd (%p1467_p2), %s1304_s22, 4294966272  ;;  %p17_p13 = scmp.ge.s32.totalorder %s1751_s24, 4   ;;  %s2226_s12 = smov %s1649_s13 }
 0x290   : > { %s2227_s13 = smov %s1653_s14  ;;  %s2228_s14 = smov %s1768_s5 }
 0x291   : > { %s2229_s15 = smov %s1751_s24  ;;  %19 = sbr.rel (!%p17_p13) target bundleno = 6 (0x6), region = 81 }
 0x296   :  { %1309 = vsyncpa [#allocation5], 1 }
 0x297   :  { %1311 = vsyncpa [#allocation5 + $0x1], 1 }
 0x298   :  { %1312 = vsyncpa [#allocation8], 1 }
 0x299   :  { %1313 = vsyncpa [#allocation6], 1 }
 0x29a   :  { %1315 = vsyncpa [#allocation6 + $0x1], 1 }

</bundles_post_ra>
